<compile_context>
chip_gen: v7x
topology: tpu7x:2x2x1
jax: 0.10.0
libtpu: 0.0.40
codegen_flags: <defaults>
</compile_context>

<pallas_src>
import jax
import jax.numpy as jnp
from jax.experimental import pallas as pl
from jax.experimental.pallas import tpu as pltpu


def _identity_kernel(x_ref, o_ref):
    # Identity forward: the base class defines no computation.
    o_ref[...] = x_ref[...]


# Candidate lane-dense widths (wide first).  Prefer one that divides n exactly
# so the wrapper needs no pad / slice pass.
_CANDIDATE_COLS = (8192, 4096, 2048, 1024, 512, 256, 128)
_FALLBACK_COLS = 1024
# ~2 MiB per block -> 2 (double-buffer) x 2 (in + out) x 2 MiB = 8 MiB of VMEM,
# safe under v5e's 16 MiB scoped default and v7x's 64 MiB physical VMEM.
_TARGET_BLOCK_BYTES = 2 * 1024 * 1024


def _sublane_align(itemsize: int) -> int:
    # f32 -> 8, bf16/f16 -> 16, int8/fp8 -> 32 (sub-32-bit dtypes pack along sublanes).
    return {4: 8, 2: 16, 1: 32}.get(itemsize, 8)


def base_model_forward(x: jax.Array) -> jax.Array:
    """Pass-through 'forward' of BaseModel implemented as a Pallas TPU kernel.

    The input (any shape / dtype) is viewed as a lane-dense 2D slab and
    streamed through VMEM in ~2 MiB tiles, then reshaped back.
    """
    orig_shape = x.shape
    dtype = x.dtype
    n = x.size
    if n == 0:  # degenerate: nothing to copy
        return x

    itemsize = jnp.dtype(dtype).itemsize
    flat = x.reshape(-1)

    # ---- choose a lane-dense column width (avoid padding when possible) ----
    cols = None
    for c in _CANDIDATE_COLS:
        if n % c == 0:
            cols = c
            break
    padded = cols is None
    if padded:
        cols = _FALLBACK_COLS
        n_pad = pl.cdiv(n, cols) * cols
        flat = jnp.pad(flat, (0, n_pad - n))
    else:
        n_pad = n

    rows = n_pad // cols
    x2d = flat.reshape(rows, cols)

    # ---- dtype-aware, multi-MiB block rows ----
    sublane = _sublane_align(itemsize)
    target_rows = max(1, _TARGET_BLOCK_BYTES // (cols * itemsize))
    if rows <= sublane:
        block_rows = rows  # full-dim exception to the (8,128) rule
    else:
        block_rows = max(sublane, (min(target_rows, rows) // sublane) * sublane)

    grid = (pl.cdiv(rows, block_rows),)  # ragged last block handled by Pallas

    out2d = pl.pallas_call(
        _identity_kernel,
        out_shape=jax.ShapeDtypeStruct((rows, cols), dtype),
        grid_spec=pltpu.PrefetchScalarGridSpec(
            num_scalar_prefetch=0,
            grid=grid,
            in_specs=[pl.BlockSpec((block_rows, cols), lambda i: (i, 0))],
            out_specs=pl.BlockSpec((block_rows, cols), lambda i: (i, 0)),
        ),
        compiler_params=pltpu.CompilerParams(
            dimension_semantics=("parallel",),
        ),
        cost_estimate=pl.CostEstimate(
            flops=0,
            transcendentals=0,
            bytes_accessed=2 * n_pad * itemsize,
        ),
        input_output_aliases={0: 0},
    )(x2d)

    if padded:
        out = out2d.reshape(-1)[:n].reshape(orig_shape)
    else:
        out = out2d.reshape(orig_shape)
    return out


if __name__ == "__main__":
    key = jax.random.PRNGKey(0)

    forward = jax.jit(base_model_forward)

    # Small NCHW-style input consistent with a typical vision model input.
    x = jax.random.normal(key, (2, 4, 16, 16), dtype=jnp.float32)
    y = jax.block_until_ready(forward(x))
    assert y.shape == x.shape and y.dtype == x.dtype
    assert bool(jnp.allclose(y, x)), "identity forward mismatch"

    # Odd-sized input exercising the padded fallback path.
    x2 = jax.random.normal(jax.random.PRNGKey(0), (3, 5, 7), dtype=jnp.float32)
    y2 = jax.block_until_ready(forward(x2))
    assert y2.shape == x2.shape and y2.dtype == x2.dtype
    assert bool(jnp.allclose(y2, x2)), "identity forward mismatch (ragged path)"

    print("KERNEL_OK")
</pallas_src>

<mosaic_0001>
module attributes {stable_mosaic.version = 11 : i64} {
  func.func @_identity_kernel(%arg0: i32, %arg1: memref<1x2048xf32, #tpu.memory_space<vmem>>, %arg2: memref<1x2048xf32, #tpu.memory_space<vmem>>) attributes {dimension_semantics = [#tpu.dimension_semantics<parallel>], iteration_bounds = array<i64: 1>, scalar_prefetch = 0 : i64, scratch_operands = 0 : i64, tpu.core_type = #tpu.core_type<tc>, window_params = [{transform_indices = @transform_0, window_bounds = array<i64: 1, 2048>}, {transform_indices = @transform_1, window_bounds = array<i64: 1, 2048>}]} {
    %c0 = arith.constant 0 : index
    %c0_0 = arith.constant 0 : index
    %0 = vector.load %arg1[%c0, %c0_0] : memref<1x2048xf32, #tpu.memory_space<vmem>>, vector<1x2048xf32>
    %c0_1 = arith.constant 0 : index
    %c0_2 = arith.constant 0 : index
    %1 = vector.load %arg2[%c0_1, %c0_2] : memref<1x2048xf32, #tpu.memory_space<vmem>>, vector<1x2048xf32>
    tpu.vector_store %arg2[%c0_1, %c0_2], %0 {strides = array<i32>} : memref<1x2048xf32, #tpu.memory_space<vmem>>, vector<1x2048xf32>,
    return
  }
  func.func @transform_0(%arg0: i32) -> (i32, i32) {
    %c0_i32 = arith.constant 0 : i32
    %c0_i32_0 = arith.constant 0 : i32
    return %arg0, %c0_i32 : i32, i32
  }
  func.func @transform_1(%arg0: i32) -> (i32, i32) {
    %c0_i32 = arith.constant 0 : i32
    %c0_i32_0 = arith.constant 0 : i32
    return %arg0, %c0_i32 : i32, i32
  }
}

</mosaic_0001>

<bundles_post_ra>
// kernel: base_model_forward.1
= control target key start
LH: loop header
LB: loop body
LE: loop exit
PB: predicated region body
PF: predicated region fallthrough
CT: control target
= control target key end

     0   :  { %s38_s0 = inlined_call_operand.vmem [shape: f32[1,2048], index: 0, kind: input, shape index: {}, may-alias: {0,1}]   ;;  %s39_s1 = inlined_call_operand.vmem [shape: f32[1,2048], index: 1, kind: output, shape index: {}, may-alias: {0,1}]  }
   0x1   :  { %v8_v0 = vld [vmem:[%s38_s0] sm:$0xff]  ;;  %v9_v1 = vld [vmem:[%s38_s0 + $0x8] sm:$0xff] }
   0x2   :  { %10 = vst [vmem:[%s39_s1] sm:$0xff] %v8_v0  ;;  %11 = vst [vmem:[%s39_s1 + $0x8] sm:$0xff] %v9_v1 }

</bundles_post_ra>
